<compile_context>
chip_gen: v7x
topology: tpu7x:2x2x1
jax: 0.10.0
libtpu: 0.0.40
codegen_flags: <defaults>
</compile_context>

<pallas_src>
import functools
import math

import jax
import jax.numpy as jnp
from jax.experimental import pallas as pl
from jax.experimental.pallas import tpu as pltpu

_LANE = 128
_SUBLANE = 8
_TARGET_BLOCK_BYTES = 4 * 1024 * 1024      # ~4 MiB f32 x block -> <=~16 MiB in flight
_VMEM_LIMIT_BYTES = 48 * 1024 * 1024       # safe on v5e/v6e (128 MiB) and v7x (64 MiB)


def _choose_tiles(B, N):
    """Pick (tb, tn): batch-chunk rows and lane-dense feature-tile width."""
    if N <= _LANE:
        tn = N                                      # full feature dim (bypasses 128 rule)
    else:
        max_tn = (N // _LANE) * _LANE               # keep block <= array; tail is masked
        if B * _LANE * 4 <= _TARGET_BLOCK_BYTES:
            budget_tn = max(_LANE, (_TARGET_BLOCK_BYTES // (B * 4) // _LANE) * _LANE)
        else:
            budget_tn = 4 * _LANE                   # batch alone blows the budget
        tn = min(max_tn, budget_tn)
    if B * tn * 4 <= _TARGET_BLOCK_BYTES or B <= _SUBLANE:
        tb = B                                      # whole batch per block (full-dim ok)
    else:
        tb = max(_SUBLANE, (_TARGET_BLOCK_BYTES // (tn * 4) // _SUBLANE) * _SUBLANE)
    return tb, tn


def _bias_reduce_kernel(*refs, inv_b, inv_n, weight, B, N, tb, tn):
    if weight is None:                              # traced weight -> SMEM scalar ref
        w_ref, x_ref, y_ref, o_ref, colsum_ref, acc_ref = refs
    else:                                           # python weight folded at compile time
        x_ref, y_ref, o_ref, colsum_ref, acc_ref = refs

    j = pl.program_id(0)                            # feature tile (outer)
    b = pl.program_id(1)                            # batch chunk (inner, fastest)
    nt = pl.num_programs(0)
    nb = pl.num_programs(1)

    @pl.when(jnp.logical_and(j == 0, b == 0))
    def _():
        acc_ref[...] = jnp.zeros_like(acc_ref)

    @pl.when(b == 0)
    def _():
        colsum_ref[...] = jnp.zeros_like(colsum_ref)

    x = x_ref[...].astype(jnp.float32)              # (tb, tn)
    if B % tb != 0:                                 # mask batch tail rows
        row = jax.lax.broadcasted_iota(jnp.int32, (tb, tn), 0) + b * tb
        x = jnp.where(row < B, x, 0.0)
    colsum_ref[...] += jnp.sum(x, axis=0, keepdims=True)   # per-feature batch sums

    @pl.when(b == nb - 1)
    def _():
        d = colsum_ref[...] * inv_b - y_ref[...].astype(jnp.float32)
        if N % tn != 0:                             # mask feature tail lanes
            col = jax.lax.broadcasted_iota(jnp.int32, (1, tn), 1) + j * tn
            d = jnp.where(col < N, d, 0.0)
        acc_ref[...] += d * d                       # element-wise accumulate (no per-step XLU)

    @pl.when(jnp.logical_and(j == nt - 1, b == nb - 1))
    def _():
        total = jnp.sum(acc_ref[...], keepdims=True)        # single cross-lane reduction
        if weight is None:
            scale = w_ref[0] * jnp.float32(inv_n)
        else:
            scale = jnp.float32(weight * inv_n)
        o_ref[...] = total * scale


def bias_reduce_loss(x, y, weight=1.0):
    """weight * MSE(mean(x, axis=0, keepdims=True), y); x:(B,*feat), y:(1,*feat)."""
    B = x.shape[0]
    N = math.prod(x.shape[1:])
    assert y.shape == (1,) + x.shape[1:], "y must match mean(x, 0).unsqueeze(0)"

    xf = x.reshape(B, N)                 # contiguous reshape: no HBM copy
    yf = y.reshape(1, N)

    tb, tn = _choose_tiles(B, N)
    nt = pl.cdiv(N, tn)
    nb = pl.cdiv(B, tb)

    static_w = float(weight) if isinstance(weight, (bool, int, float)) else None

    kernel = functools.partial(
        _bias_reduce_kernel, inv_b=1.0 / B, inv_n=1.0 / N,
        weight=static_w, B=B, N=N, tb=tb, tn=tn)

    in_specs = [
        pl.BlockSpec((tb, tn), lambda j, b: (b, j)),          # x (batch-chunk, feat-tile)
        pl.BlockSpec((1, tn), lambda j, b: (0, j)),           # y (feat-tile)
    ]
    args = [xf, yf]
    if static_w is None:                                      # traced weight -> SMEM
        in_specs.insert(0, pl.BlockSpec(memory_space=pltpu.MemorySpace.SMEM))
        args.insert(0, jnp.asarray(weight, jnp.float32).reshape(1))

    out = pl.pallas_call(
        kernel,
        out_shape=jax.ShapeDtypeStruct((1, 1), jnp.float32),
        grid=(nt, nb),
        in_specs=in_specs,
        out_specs=pl.BlockSpec((1, 1), lambda j, b: (0, 0)),  # resident scalar output
        scratch_shapes=[pltpu.VMEM((1, tn), jnp.float32),     # per-feature batch sums
                        pltpu.VMEM((1, tn), jnp.float32)],    # running sum of sq-diff
        compiler_params=pltpu.CompilerParams(
            dimension_semantics=("arbitrary", "arbitrary"),   # both are reduction axes
            vmem_limit_bytes=_VMEM_LIMIT_BYTES),
    )(*args)
    return out[0, 0]


def _reference(x, y, weight):
    avg = jnp.mean(x.astype(jnp.float32), axis=0, keepdims=True)
    return weight * jnp.mean((avg - y.astype(jnp.float32)) ** 2)


if __name__ == "__main__":
    key = jax.random.PRNGKey(0)
    kx, ky, kx2, ky2 = jax.random.split(key, 4)

    # Main shape implied by the module: batch=2, channels=4, spatial=16x16.
    B, C, H, W = 2, 4, 16, 16
    x = jax.random.normal(kx, (B, C, H, W), jnp.float32)
    y = jax.random.normal(ky, (1, C, H, W), jnp.float32)

    # Default weight=1 (Python number -> folded at compile time).
    loss = bias_reduce_loss(x, y)
    jax.block_until_ready(loss)
    assert loss.shape == ()
    assert jnp.allclose(loss, _reference(x, y, 1.0), rtol=1e-5, atol=1e-6)

    # Traced (array) weight exercises the SMEM scalar path.
    loss_w = bias_reduce_loss(x, y, jnp.asarray(2.5, jnp.float32))
    jax.block_until_ready(loss_w)
    assert jnp.allclose(loss_w, _reference(x, y, 2.5), rtol=1e-5, atol=1e-6)

    # Non-128-multiple feature count (N=300) exercises the masked-tail path.
    x2 = jax.random.normal(kx2, (2, 3, 10, 10), jnp.float32)
    y2 = jax.random.normal(ky2, (1, 3, 10, 10), jnp.float32)
    loss_t = bias_reduce_loss(x2, y2, 1.5)
    jax.block_until_ready(loss_t)
    assert jnp.allclose(loss_t, _reference(x2, y2, 1.5), rtol=1e-5, atol=1e-6)

    print("KERNEL_OK")
</pallas_src>

<mosaic_0001>
module attributes {stable_mosaic.version = 11 : i64} {
  func.func @_bias_reduce_kernel(%arg0: i32, %arg1: i32, %arg2: memref<2x1024xf32, #tpu.memory_space<vmem>>, %arg3: memref<1x1024xf32, #tpu.memory_space<vmem>>, %arg4: memref<1x1xf32, #tpu.memory_space<vmem>>, %arg5: memref<1x1024xf32, #tpu.memory_space<vmem>>, %arg6: memref<1x1024xf32, #tpu.memory_space<vmem>>) attributes {dimension_semantics = [#tpu.dimension_semantics<arbitrary>, #tpu.dimension_semantics<arbitrary>], iteration_bounds = array<i64: 1, 1>, scalar_prefetch = 0 : i64, scratch_operands = 2 : i64, tpu.core_type = #tpu.core_type<tc>, window_params = [{transform_indices = @transform_0, window_bounds = array<i64: 2, 1024>}, {transform_indices = @transform_1, window_bounds = array<i64: 1, 1024>}, {pipeline_mode = #tpu.pipeline_mode<synchronous>, transform_indices = @transform_2, window_bounds = array<i64: 1, 1>}]} {
    %c0_i32 = arith.constant 0 : i32
    %0 = arith.cmpi eq, %arg0, %c0_i32 : i32
    %c0_i32_0 = arith.constant 0 : i32
    %1 = arith.cmpi eq, %arg1, %c0_i32_0 : i32
    %2 = arith.andi %0, %1 : i1
    %3 = arith.extui %2 : i1 to i32
    %c0_i32_1 = arith.constant 0 : i32
    %4 = arith.cmpi ne, %3, %c0_i32_1 : i32
    scf.if %4 {
      %cst_14 = arith.constant 0.000000e+00 : f32
      %22 = vector.broadcast %cst_14 : f32 to vector<1x1024xf32>
      %c0_15 = arith.constant 0 : index
      %c0_16 = arith.constant 0 : index
      %23 = vector.load %arg6[%c0_15, %c0_16] : memref<1x1024xf32, #tpu.memory_space<vmem>>, vector<1x1024xf32>
      tpu.vector_store %arg6[%c0_15, %c0_16], %22 {strides = array<i32>} : memref<1x1024xf32, #tpu.memory_space<vmem>>, vector<1x1024xf32>,
    } else {
    }
    %c0_i32_2 = arith.constant 0 : i32
    %5 = arith.cmpi eq, %arg1, %c0_i32_2 : i32
    %6 = arith.extui %5 : i1 to i32
    %c0_i32_3 = arith.constant 0 : i32
    %7 = arith.cmpi ne, %6, %c0_i32_3 : i32
    scf.if %7 {
      %cst_14 = arith.constant 0.000000e+00 : f32
      %22 = vector.broadcast %cst_14 : f32 to vector<1x1024xf32>
      %c0_15 = arith.constant 0 : index
      %c0_16 = arith.constant 0 : index
      %23 = vector.load %arg5[%c0_15, %c0_16] : memref<1x1024xf32, #tpu.memory_space<vmem>>, vector<1x1024xf32>
      tpu.vector_store %arg5[%c0_15, %c0_16], %22 {strides = array<i32>} : memref<1x1024xf32, #tpu.memory_space<vmem>>, vector<1x1024xf32>,
    } else {
    }
    %c0 = arith.constant 0 : index
    %c0_4 = arith.constant 0 : index
    %8 = vector.load %arg2[%c0, %c0_4] : memref<2x1024xf32, #tpu.memory_space<vmem>>, vector<2x1024xf32>
    %c0_5 = arith.constant 0 : index
    %c0_6 = arith.constant 0 : index
    %9 = vector.load %arg5[%c0_5, %c0_6] : memref<1x1024xf32, #tpu.memory_space<vmem>>, vector<1x1024xf32>
    %cst = arith.constant dense<0.000000e+00> : vector<1024xf32>
    %10 = vector.multi_reduction <add>, %8, %cst [0] : vector<2x1024xf32> to vector<1024xf32>
    %11 = vector.shape_cast %10 : vector<1024xf32> to vector<1x1024xf32>
    %12 = arith.addf %9, %11 : vector<1x1024xf32>
    %c0_7 = arith.constant 0 : index
    %c0_8 = arith.constant 0 : index
    %13 = vector.load %arg5[%c0_7, %c0_8] : memref<1x1024xf32, #tpu.memory_space<vmem>>, vector<1x1024xf32>
    tpu.vector_store %arg5[%c0_7, %c0_8], %12 {strides = array<i32>} : memref<1x1024xf32, #tpu.memory_space<vmem>>, vector<1x1024xf32>,
    %c0_i32_9 = arith.constant 0 : i32
    %14 = arith.cmpi eq, %arg1, %c0_i32_9 : i32
    %15 = arith.extui %14 : i1 to i32
    %c0_i32_10 = arith.constant 0 : i32
    %16 = arith.cmpi ne, %15, %c0_i32_10 : i32
    scf.if %16 {
      %c0_14 = arith.constant 0 : index
      %c0_15 = arith.constant 0 : index
      %22 = vector.load %arg5[%c0_14, %c0_15] : memref<1x1024xf32, #tpu.memory_space<vmem>>, vector<1x1024xf32>
      %cst_16 = arith.constant 5.000000e-01 : f32
      %23 = vector.broadcast %cst_16 : f32 to vector<1x1024xf32>
      %24 = arith.mulf %22, %23 : vector<1x1024xf32>
      %c0_17 = arith.constant 0 : index
      %c0_18 = arith.constant 0 : index
      %25 = vector.load %arg3[%c0_17, %c0_18] : memref<1x1024xf32, #tpu.memory_space<vmem>>, vector<1x1024xf32>
      %26 = arith.subf %24, %25 : vector<1x1024xf32>
      %c0_19 = arith.constant 0 : index
      %c0_20 = arith.constant 0 : index
      %27 = vector.load %arg6[%c0_19, %c0_20] : memref<1x1024xf32, #tpu.memory_space<vmem>>, vector<1x1024xf32>
      %28 = arith.mulf %26, %26 : vector<1x1024xf32>
      %29 = arith.addf %27, %28 : vector<1x1024xf32>
      %c0_21 = arith.constant 0 : index
      %c0_22 = arith.constant 0 : index
      %30 = vector.load %arg6[%c0_21, %c0_22] : memref<1x1024xf32, #tpu.memory_space<vmem>>, vector<1x1024xf32>
      tpu.vector_store %arg6[%c0_21, %c0_22], %29 {strides = array<i32>} : memref<1x1024xf32, #tpu.memory_space<vmem>>, vector<1x1024xf32>,
    } else {
    }
    %c0_i32_11 = arith.constant 0 : i32
    %17 = arith.cmpi eq, %arg0, %c0_i32_11 : i32
    %c0_i32_12 = arith.constant 0 : i32
    %18 = arith.cmpi eq, %arg1, %c0_i32_12 : i32
    %19 = arith.andi %17, %18 : i1
    %20 = arith.extui %19 : i1 to i32
    %c0_i32_13 = arith.constant 0 : i32
    %21 = arith.cmpi ne, %20, %c0_i32_13 : i32
    scf.if %21 {
      %c0_14 = arith.constant 0 : index
      %c0_15 = arith.constant 0 : index
      %22 = vector.load %arg6[%c0_14, %c0_15] : memref<1x1024xf32, #tpu.memory_space<vmem>>, vector<1x1024xf32>
      %23 = vector.shape_cast %22 : vector<1x1024xf32> to vector<1x1x1024xf32>
      %cst_16 = arith.constant dense<0.000000e+00> : vector<1xf32>
      %24 = vector.multi_reduction <add>, %23, %cst_16 [1, 2] : vector<1x1x1024xf32> to vector<1xf32>
      %25 = vector.shape_cast %24 : vector<1xf32> to vector<1x1x1xf32>
      %26 = vector.extract %25[0, 0, 0] : f32 from vector<1x1x1xf32>
      %27 = vector.broadcast %26 : f32 to vector<1x1xf32>
      %cst_17 = arith.constant 9.765625E-4 : f32
      %28 = vector.broadcast %cst_17 : f32 to vector<1x1xf32>
      %29 = arith.mulf %27, %28 : vector<1x1xf32>
      %c0_18 = arith.constant 0 : index
      %c0_19 = arith.constant 0 : index
      %30 = vector.load %arg4[%c0_18, %c0_19] : memref<1x1xf32, #tpu.memory_space<vmem>>, vector<1x1xf32>
      tpu.vector_store %arg4[%c0_18, %c0_19], %29 {strides = array<i32>} : memref<1x1xf32, #tpu.memory_space<vmem>>, vector<1x1xf32>,
    } else {
    }
    return
  }
  func.func @transform_0(%arg0: i32, %arg1: i32) -> (i32, i32) {
    %c0_i32 = arith.constant 0 : i32
    return %arg1, %arg0 : i32, i32
  }
  func.func @transform_1(%arg0: i32, %arg1: i32) -> (i32, i32) {
    %c0_i32 = arith.constant 0 : i32
    %c0_i32_0 = arith.constant 0 : i32
    return %c0_i32, %arg0 : i32, i32
  }
  func.func @transform_2(%arg0: i32, %arg1: i32) -> (i32, i32) {
    %c0_i32 = arith.constant 0 : i32
    %c0_i32_0 = arith.constant 0 : i32
    %c0_i32_1 = arith.constant 0 : i32
    return %c0_i32, %c0_i32_0 : i32, i32
  }
}

</mosaic_0001>

<bundles_post_ra>
// kernel: tpu_custom_call.1
= control target key start
LH: loop header
LB: loop body
LE: loop exit
PB: predicated region body
PF: predicated region fallthrough
CT: control target
= control target key end

     0   :  { %7 = vsyncpa [#allocation5], 0  ;;  %s484_s0 = inlined_call_operand.hbm [shape: f32[2,1024], index: 0, kind: input, shape index: {}]   ;;  %s485_s1 = inlined_call_operand.hbm [shape: f32[1,1024], index: 1, kind: input, shape index: {}]   ;;  %s486_s2 = inlined_call_operand.hbm [shape: f32[1,1], index: 2, kind: output, shape index: {}]  }
   0x1   :  { %8 = vsyncpa [#allocation8], 0 }
   0x2   :  { %9 = vsyncpa [#allocation6], 0  ;;  %s392_s9 = smov [#allocation4]   ;;  %s393_s11 = smov [#allocation7]  }
   0x3   :  { %s16_s10 = sshll.u32 %s392_s9, 4  ;;  %s26_s12 = sshll.u32 %s393_s11, 4  ;;  %s17_s10 = int_to_ptr.vmem [resolvable:$true] %s16_s10  ;;  %s27_s12 = int_to_ptr.vmem [resolvable:$true] %s26_s12 }
   0x4   :  { %s320_s15 = scalar_lea.hbm %s484_s0, 256 }
   0x5   :  { %p321_p0 = scmp.ne.s32.totalorder %s484_s0, %s320_s15  ;;  %p324_p1 = scmp.lt.u32.totalorder %s320_s15, %s484_s0 }
   0x7   :  { %p326_p2 = pnand %p324_p1, %p321_p0 }
   0x9   :  { %329 = shalt.err (!%p326_p2)
}
   0xa   :  { %s330_s20 = scalar_lea.vmem %s17_s10, 256  ;;  %p335_p4 = scmp.lt.s32.totalorder %s17_s10, %s17_s10 }
   0xb   :  { %p331_p3 = scmp.ne.s32.totalorder %s17_s10, %s330_s20  ;;  %p336_p5 = scmp.lt.s32.totalorder %s330_s20, %s330_s20 }
   0xd   :  { %p337_p6 = por %p336_p5, %p335_p4 }
   0xf   :  { %p338_p7 = pnand %p337_p6, %p331_p3 }
  0x11   :  { %341 = shalt.err (!%p338_p7)
}
  0x12   :  { %19 = dma.hbm_to_vmem [thread:$0]  %s484_s0, 256, %s17_s10, [#allocation5]  }
  0x13   :  { %s342_s25 = scalar_lea.hbm %s485_s1, 128 }
  0x14   :  { %p343_p8 = scmp.ne.s32.totalorder %s485_s1, %s342_s25  ;;  %p346_p9 = scmp.lt.u32.totalorder %s342_s25, %s485_s1 }
  0x16   :  { %p348_p10 = pnand %p346_p9, %p343_p8 }
  0x18   :  { %351 = shalt.err (!%p348_p10)
}
  0x19   :  { %s352_s30 = scalar_lea.vmem %s27_s12, 128  ;;  %p357_p12 = scmp.lt.s32.totalorder %s27_s12, %s27_s12 }
  0x1a   :  { %p353_p11 = scmp.ne.s32.totalorder %s27_s12, %s352_s30  ;;  %p358_p13 = scmp.lt.s32.totalorder %s352_s30, %s352_s30 }
  0x1c   :  { %p359_p0 = por %p358_p13, %p357_p12 }
  0x1e   :  { %p360_p1 = pnand %p359_p0, %p353_p11 }
  0x20   :  { %363 = shalt.err (!%p360_p1)
}
  0x21   :  { %29 = dma.hbm_to_vmem [thread:$0]  %s485_s1, 128, %s27_s12, [#allocation8]  }
  0x22   :  { %386 = dma.done.wait [#allocation5], 256  }
  0x23   :  { %387 = vsyncadd [#allocation5], 4294967040 }
  0x24   :  { %388 = dma.done.wait [#allocation8], 128  }
  0x25   :  { %389 = vsyncadd [#allocation8], 4294967168  ;;  %v56_v0 = vlaneseq  ;;  %v394_v1 = vmov 1983009808   ;;  %v395_v5 = vmov 1966171168  }
  0x26   :  { %v54_v2 = vunpack.c.l.s4 %v394_v1  ;;  %v164_v6 = vunpack.c.l.s4 %v395_v5  ;;  %v47_v8 = vld [vmem:[#allocation4] sm:$0xff]  ;;  %v48_v9 = vld [vmem:[#allocation4 + $0x8] sm:$0xff]  ;;  %vm94_vm0 = vcmask 1041408   ;;  %vm266_vm1 = vcmask 1040384   ;;  %s396_s1 = smov [#allocation9]  }
  0x27   :  { %v436_v3 = vshrl.u32 %v56_v0, 7  ;;  %v52_v11 = vcombine.high %v47_v8, %v47_v8  ;;  %v69_v13 = vcombine.high %v48_v9, %v48_v9  ;;  %s301_s4 = sshll.u32 %s396_s1, 4  ;;  %vm293_vm2 = vcmask 0   ;;  %s302_s4 = int_to_ptr.vmem [resolvable:$true] %s301_s4 }
  0x28   :  { %v55_v4 = vunpack.c.0.s8 %v54_v2  ;;  %v165_v10 = vunpack.c.0.s8 %v164_v6  ;;  %s364_s6 = scalar_lea.vmem %s302_s4, 16  ;;  %s368_s7 = scalar_lea.vmem %s302_s4, 32 }
  0x29   :  { %p365_p2 = scmp.ne.s32.totalorder %s302_s4, %s364_s6  ;;  %p369_p3 = scmp.lt.s32.totalorder %s302_s4, %s302_s4 }
  0x2a   :  { %v58_v7 = vsub.s32 %v55_v4, %v436_v3  ;;  %v442_v21 = vsub.s32 %v165_v10, %v436_v3  ;;  %p370_p4 = scmp.lt.s32.totalorder %s368_s7, %s364_s6 }
  0x2c   :  { %v59_v12 = vrot.slane %v47_v8, %v58_v7  ;;  %v76_v14 = vrot.slane %v48_v9, %v58_v7  ;;  %v66_v15 = vrot.slane %v52_v11, %v58_v7  ;;  %v83_v17 = vrot.slane %v69_v13, %v58_v7  ;;  %p371_p5 = por %p370_p4, %p369_p3 }
  0x2e   :  { %v67_v16 = vcombine.high %v59_v12, %v59_v12  ;;  %v84_v18 = vcombine.high %v76_v14, %v76_v14  ;;  %v95_v19 = vsel %vm94_vm0, %v59_v12, 0.0  ;;  %v123_v20 = vsel %vm94_vm0, %v76_v14, 0.0  ;;  %p372_p6 = pnand %p371_p5, %p365_p2 }
  0x2f   :  { %v68_v22 = vcombine.high %v66_v15, %v66_v15  ;;  %v85_v23 = vcombine.high %v83_v17, %v83_v17  ;;  %v96_v24 = vrot.slane %v95_v19, 4  ;;  %v109_v27 = vsel %vm94_vm0, %v66_v15, 0.0 }
  0x30   :  { %v102_v25 = vsel %vm94_vm0, %v67_v16, 0.0  ;;  %v124_v28 = vrot.slane %v123_v20, 4  ;;  %v130_v29 = vsel %vm94_vm0, %v84_v18, 0.0  ;;  %v110_v31 = vrot.slane %v109_v27, 4 }
  0x31   :  { %v103_v26 = vrot.slane %v102_v25, 4  ;;  %v97_v30 = vadd.f32 %v96_v24, %v95_v19  ;;  %v116_v32 = vsel %vm94_vm0, %v68_v22, 0.0  ;;  %v131_v33 = vrot.slane %v130_v29, 4 }
  0x32   :  { %v117_v35 = vrot.slane %v116_v32, 4  ;;  %v125_v36 = vadd.f32 %v124_v28, %v123_v20  ;;  %v137_v37 = vsel %vm94_vm0, %v83_v17, 0.0  ;;  %v111_v39 = vadd.f32 %v110_v31, %v109_v27 }
  0x33   :  { %v104_v34 = vadd.f32 %v103_v26, %v102_v25  ;;  %v98_v38 = vrot.slane %v97_v30, 2  ;;  %v132_v40 = vadd.f32 %v131_v33, %v130_v29  ;;  %v138_v41 = vrot.slane %v137_v37, 4  ;;  %v216_v29 = vld [vmem:[#allocation7] sm:$0xff] }
  0x34   :  { %v118_v43 = vadd.f32 %v117_v35, %v116_v32  ;;  %v126_v44 = vrot.slane %v125_v36, 2  ;;  %v144_v45 = vsel %vm94_vm0, %v85_v23, 0.0  ;;  %v112_v47 = vrot.slane %v111_v39, 2 }
  0x35   :  { %v105_v42 = vrot.slane %v104_v34, 2  ;;  %v99_v46 = vadd.f32 %v98_v38, %v97_v30  ;;  %v133_v48 = vrot.slane %v132_v40, 2  ;;  %v139_v49 = vadd.f32 %v138_v41, %v137_v37 }
  0x36   :  { %v127_v50 = vadd.f32 %v126_v44, %v125_v36  ;;  %v145_v51 = vrot.slane %v144_v45, 4  ;;  %v119_v53 = vrot.slane %v118_v43, 2  ;;  %v113_v56 = vadd.f32 %v112_v47, %v111_v39 }
  0x37   :  { %v106_v52 = vadd.f32 %v105_v42, %v104_v34  ;;  %v140_v54 = vrot.slane %v139_v49, 2  ;;  %v100_v55 = vrot.slane %v99_v46, 1  ;;  %v134_v57 = vadd.f32 %v133_v48, %v132_v40 }
  0x38   :  { %v146_v58 = vadd.f32 %v145_v51, %v144_v45  ;;  %v120_v60 = vadd.f32 %v119_v53, %v118_v43  ;;  %v128_v61 = vrot.slane %v127_v50, 1  ;;  %v114_v63 = vrot.slane %v113_v56, 1 }
  0x39   :  { %v107_v59 = vrot.slane %v106_v52, 1  ;;  %v101_v62 = vadd.f32 %v100_v55, %v99_v46  ;;  %v135_v0 = vrot.slane %v134_v57, 1  ;;  %v141_v1 = vadd.f32 %v140_v54, %v139_v49 }
  0x3a   :  { %v121_v4 = vrot.slane %v120_v60, 1  ;;  %v129_v5 = vadd.f32 %v128_v61, %v127_v50  ;;  %v147_v6 = vrot.slane %v146_v58, 2  ;;  %v115_v7 = vadd.f32 %v114_v63, %v113_v56 }
  0x3b   :  { %v108_v2 = vadd.f32 %v107_v59, %v106_v52  ;;  %v136_v8 = vadd.f32 %v135_v0, %v134_v57  ;;  %v142_v9 = vrot.slane %v141_v1, 1  ;;  %v228_v31 = vsub.s32 0, %v436_v3 }
  0x3c   :  { %v122_v10 = vadd.f32 %v121_v4, %v120_v60  ;;  %v148_v11 = vadd.f32 %v147_v6, %v146_v58  ;;  %v232_v33 = vsub.s32 1, %v436_v3  ;;  %v236_v34 = vsub.s32 2, %v436_v3 }
  0x3d   :  { %v159_v12 = vcombine.low %v101_v62, %v108_v2  ;;  %v143_v13 = vadd.f32 %v142_v9, %v141_v1  ;;  %v161_v16 = vcombine.low %v129_v5, %v136_v8  ;;  %v240_v35 = vsub.s32 3, %v436_v3 }
  0x3e   :  { %v149_v14 = vrot.slane %v148_v11, 1  ;;  %v160_v15 = vcombine.low %v115_v7, %v122_v10  ;;  %v244_v37 = vsub.s32 4, %v436_v3  ;;  %v248_v38 = vsub.s32 5, %v436_v3 }
  0x3f   :  { %v169_v17 = vrot.slane %v159_v12, %v442_v21  ;;  %v183_v22 = vrot.slane %v161_v16, %v442_v21  ;;  %v252_v42 = vsub.s32 6, %v436_v3  ;;  %v256_v49 = vsub.s32 7, %v436_v3 }
  0x40   :  { %v150_v18 = vadd.f32 %v149_v14, %v148_v11  ;;  %v176_v19 = vrot.slane %v160_v15, %v442_v21 }
  0x42   :  { %v162_v20 = vcombine.low %v143_v13, %v150_v18  ;;  %v191_v23 = vcombine.low %v169_v17, %v176_v19 }
  0x44   :  { %v190_v24 = vrot.slane %v162_v20, %v442_v21  ;;  %v199_v26 = vrot.slane %v191_v23, %v442_v21 }
  0x46   :  { %v192_v25 = vcombine.low %v183_v22, %v190_v24 }
  0x48   :  { %v206_v27 = vrot.slane %v192_v25, %v442_v21 }
  0x4a   :  { %v207_v28 = vcombine.low %v199_v26, %v206_v27 }
  0x4c   :  { %v215_v30 = vmul.f32 0.5, %v207_v28 }
  0x4e   :  { %v217_v32 = vsub.f32 %v215_v30, %v216_v29 }
  0x50   :  { %v219_v36 = vmul.f32 %v217_v32, %v217_v32 }
  0x52   :  { %v229_v39 = vrot.slane %v219_v36, %v228_v31  ;;  %v233_v21 = vrot.slane %v219_v36, %v232_v33  ;;  %v237_v40 = vrot.slane %v219_v36, %v236_v34  ;;  %v241_v41 = vrot.slane %v219_v36, %v240_v35 }
  0x53   :  { %v245_v43 = vrot.slane %v219_v36, %v244_v37  ;;  %v249_v48 = vrot.slane %v219_v36, %v248_v38  ;;  %v253_v52 = vrot.slane %v219_v36, %v252_v42  ;;  %v257_v55 = vrot.slane %v219_v36, %v256_v49 }
  0x54   :  { %v267_v44 = vsel %vm266_vm1, %v229_v39, 0.0  ;;  %v268_v45 = vsel %vm266_vm1, %v233_v21, 0.0  ;;  %v270_v46 = vsel %vm266_vm1, %v237_v40, 0.0  ;;  %v272_v50 = vsel %vm266_vm1, %v241_v41, 0.0 }
  0x55   :  { %v269_v47 = vadd.f32 %v268_v45, %v267_v44  ;;  %v274_v53 = vsel %vm266_vm1, %v245_v43, 0.0  ;;  %v276_v56 = vsel %vm266_vm1, %v249_v48, 0.0  ;;  %v278_v58 = vsel %vm266_vm1, %v253_v52, 0.0 }
  0x56   :  { %v280_v60 = vsel %vm266_vm1, %v257_v55, 0.0 }
  0x57   :  { %v271_v51 = vadd.f32 %v270_v46, %v269_v47 }
  0x59   :  { %v273_v54 = vadd.f32 %v272_v50, %v271_v51 }
  0x5b   :  { %v275_v57 = vadd.f32 %v274_v53, %v273_v54 }
  0x5d   :  { %v277_v59 = vadd.f32 %v276_v56, %v275_v57 }
  0x5f   :  { %v279_v61 = vadd.f32 %v278_v58, %v277_v59 }
  0x61   :  { %v281_v62 = vadd.f32 %v280_v60, %v279_v61 }
  0x63   :  { %282 = vadd.xlane.f32.xlu0 %v281_v62 }
  0xf0   :  { %v283_v3 = vpop.xlane.xlu0 %282 }
  0xf1   :  { %v284_v63 = vrot.slane %v283_v3, 4 }
  0xf3   :  { %v285_v0 = vadd.f32 %v284_v63, %v283_v3 }
  0xf5   :  { %v286_v1 = vrot.slane %v285_v0, 2 }
  0xf7   :  { %v287_v2 = vadd.f32 %v286_v1, %v285_v0 }
  0xf9   :  { %v288_v4 = vrot.slane %v287_v2, 1 }
  0xfb   :  { %v289_v5 = vadd.f32 %v288_v4, %v287_v2 }
  0xfd   :  { %311 = vpush %v289_v5 }
 0x12e   :  { %s312_s5 = spop %311 }
 0x12f   :  { %v291_v6 = vstv %s312_s5 }
 0x130   :  { %v292_v7 = vmul.f32 0.0009765625, %v291_v6 }
 0x132   :  { %294 = vst.msk [vmem:[#allocation9] sm:$0x1] %vm293_vm2, %v292_v7 }
 0x133   :  { %375 = shalt.err (!%p372_p6)
}
 0x134   :  { %s376_s10 = scalar_lea.hbm %s486_s2, 16 }
 0x135   :  { %p377_p7 = scmp.ne.s32.totalorder %s486_s2, %s376_s10  ;;  %p380_p8 = scmp.lt.u32.totalorder %s376_s10, %s486_s2 }
 0x137   :  { %p382_p9 = pnand %p380_p8, %p377_p7 }
 0x139   :  { %385 = shalt.err (!%p382_p9)
}
 0x13a   :  { %304 = dma.vmem_to_hbm [thread:$0]  %s302_s4, 16, %s486_s2, [#allocation6]  }
 0x13b   :  { %390 = dma.done.wait [#allocation6], 16  }
 0x13c   :  { %391 = vsyncadd [#allocation6], 4294967280 }
 0x13d   :  { %308 = vsyncpa [#allocation5], 1 }
 0x13e   :  { %309 = vsyncpa [#allocation8], 1 }
 0x13f   :  { %310 = vsyncpa [#allocation6], 1 }

</bundles_post_ra>
